<compile_context>
chip_gen: v6e
topology: v6e:2x2x1
jax: 0.10.0
libtpu: 0.0.40
codegen_flags: <defaults>
</compile_context>

<pallas_src>
import jax
import jax.numpy as jnp
from jax.experimental import pallas as pl
from jax.experimental.pallas import tpu as pltpu

_CHUNK_THRESHOLD_BYTES = 8 << 20   # single DMA below this, chunked above
_MAX_DMA_CHUNKS = 8                # max concurrent DMAs for large inputs


def _make_dma_copy_kernel(row_chunks):
    """Kernel copying x_ref -> o_ref (both left in HBM) via async DMA(s).

    row_chunks: static list of (row_start, row_size) tuples covering all rows.
    All copies are started first (concurrent DMAs), then all are waited on.
    """
    def kernel(x_ref, o_ref, sem):
        copies = []
        for i, (start, size) in enumerate(row_chunks):
            cp = pltpu.make_async_copy(
                x_ref.at[pl.ds(start, size)],
                o_ref.at[pl.ds(start, size)],
                sem.at[i],
            )
            cp.start()
            copies.append(cp)
        for cp in copies:
            cp.wait()
    return kernel


def _row_chunks(n_rows, n_chunks):
    """Split n_rows into n_chunks contiguous (start, size) spans (static)."""
    base, rem = divmod(n_rows, n_chunks)
    chunks, start = [], 0
    for i in range(n_chunks):
        size = base + (1 if i < rem else 0)
        if size > 0:
            chunks.append((start, size))
        start += size
    return chunks


def unflatten(x, C, H, W):
    """x: (N, C*H*W) -> (N, C, H, W). Copy runs as HBM->HBM DMA; the 4-D
    reshape is a free XLA metadata view in the wrapper."""
    N, F = x.shape
    assert F == C * H * W, "input second dim must equal C*H*W"

    total_bytes = N * F * jnp.dtype(x.dtype).itemsize
    if total_bytes > _CHUNK_THRESHOLD_BYTES and N > 1:
        n_chunks = min(_MAX_DMA_CHUNKS, N)
    else:
        n_chunks = 1
    chunks = _row_chunks(N, n_chunks)

    y = pl.pallas_call(
        _make_dma_copy_kernel(chunks),
        out_shape=jax.ShapeDtypeStruct((N, F), x.dtype),
        in_specs=[pl.BlockSpec(memory_space=pl.ANY)],
        out_specs=pl.BlockSpec(memory_space=pl.ANY),
        scratch_shapes=[pltpu.SemaphoreType.DMA((len(chunks),))],
    )(x)

    # Free metadata-only reshape (identical to torch .view on contiguous input).
    return jnp.reshape(y, (N, C, H, W))


def _check(N, C, H, W, key):
    x = jax.random.normal(key, (N, C * H * W), dtype=jnp.float32)
    out = jax.block_until_ready(unflatten(x, C, H, W))
    ref = x.reshape(N, C, H, W)
    assert out.shape == (N, C, H, W)
    assert out.dtype == x.dtype
    assert bool(jnp.array_equal(out, ref))


if __name__ == "__main__":
    key = jax.random.PRNGKey(0)
    k1, k2 = jax.random.split(key)

    # Module defaults: C=128, H=7, W=7, small batch N=2 (single-DMA path).
    _check(2, 128, 7, 7, k1)
    # Larger batch to exercise the chunked multi-DMA path (>8 MiB total).
    _check(512, 128, 7, 7, k2)

    print("KERNEL_OK")
</pallas_src>

<mosaic_0001>
module attributes {stable_mosaic.version = 11 : i64} {
  func.func @kernel(%arg0: memref<2x6272xf32, #tpu.memory_space<any>>, %arg1: memref<2x6272xf32, #tpu.memory_space<any>>, %arg2: memref<1x!tpu.dma_semaphore, #tpu.memory_space<semaphore_mem>>) attributes {dimension_semantics = [], scalar_prefetch = 0 : i64, scratch_operands = 1 : i64, tpu.core_type = #tpu.core_type<tc>} {
    %c0_i32 = arith.constant 0 : i32
    %c0_i32_0 = arith.constant 0 : i32
    %c0_i32_1 = arith.constant 0 : i32
    %0 = tpu.memref_slice %arg0[%c0_i32_0, %c0_i32_1] : memref<2x6272xf32, #tpu.memory_space<any>> -> memref<2x6272xf32, #tpu.memory_space<any>>
    %c0_i32_2 = arith.constant 0 : i32
    %c0_i32_3 = arith.constant 0 : i32
    %1 = tpu.memref_slice %arg1[%c0_i32_2, %c0_i32_3] : memref<2x6272xf32, #tpu.memory_space<any>> -> memref<2x6272xf32, #tpu.memory_space<any>>
    %2 = tpu.memref_slice %arg2[%c0_i32] : memref<1x!tpu.dma_semaphore, #tpu.memory_space<semaphore_mem>> -> memref<1x!tpu.dma_semaphore, #tpu.memory_space<semaphore_mem>>
    %3 = tpu.memref_squeeze %2 : memref<1x!tpu.dma_semaphore, #tpu.memory_space<semaphore_mem>> -> memref<!tpu.dma_semaphore, #tpu.memory_space<semaphore_mem>>
    tpu.enqueue_dma source(%0 : memref<2x6272xf32, #tpu.memory_space<any>>) target(%1 : memref<2x6272xf32, #tpu.memory_space<any>>) target_semaphore(%3 : memref<!tpu.dma_semaphore, #tpu.memory_space<semaphore_mem>>)
    %c0_i32_4 = arith.constant 0 : i32
    %c0_i32_5 = arith.constant 0 : i32
    %c0_i32_6 = arith.constant 0 : i32
    %4 = tpu.memref_slice %arg0[%c0_i32_5, %c0_i32_6] : memref<2x6272xf32, #tpu.memory_space<any>> -> memref<2x6272xf32, #tpu.memory_space<any>>
    %c0_i32_7 = arith.constant 0 : i32
    %c0_i32_8 = arith.constant 0 : i32
    %5 = tpu.memref_slice %arg1[%c0_i32_7, %c0_i32_8] : memref<2x6272xf32, #tpu.memory_space<any>> -> memref<2x6272xf32, #tpu.memory_space<any>>
    %6 = tpu.memref_slice %arg2[%c0_i32_4] : memref<1x!tpu.dma_semaphore, #tpu.memory_space<semaphore_mem>> -> memref<1x!tpu.dma_semaphore, #tpu.memory_space<semaphore_mem>>
    %7 = tpu.memref_squeeze %6 : memref<1x!tpu.dma_semaphore, #tpu.memory_space<semaphore_mem>> -> memref<!tpu.dma_semaphore, #tpu.memory_space<semaphore_mem>>
    tpu.wait_dma2 semaphore(%7 : memref<!tpu.dma_semaphore, #tpu.memory_space<semaphore_mem>>) src(%4 : memref<2x6272xf32, #tpu.memory_space<any>>) dst(%5 : memref<2x6272xf32, #tpu.memory_space<any>>)
    return
  }
}

</mosaic_0001>

<bundles_post_ra>
// kernel: tpu_custom_call.1
= control target key start
LH: loop header
LB: loop body
LE: loop exit
PB: predicated region body
PF: predicated region fallthrough
CT: control target
= control target key end

     0   :  { %s29_s6 = smov [#allocation2]   ;;  %s30_s7 = smov 131072   ;;  %s48_s0 = inlined_call_operand.hbm [shape: f32[2,6272], index: 0, kind: input, shape index: {}]   ;;  %s49_s1 = inlined_call_operand.hbm [shape: f32[2,6272], index: 1, kind: output, shape index: {}]  }
   0x1   :  { %s31_s8 = smov 0  }
   0x2   :  { %12 = dma.general %s48_s0, 1568, %s49_s1, %s29_s6, %s30_s7, [#allocation4], %s31_s8, 0  }
   0x3   :  { %27 = dma.done.wait [#allocation2], 1568 }
   0x4   :  { %28 = vsyncadd [#allocation2], 4294965728 }
   0x5   :  { %17 = vsyncmov [#allocation2] }
   0x8   :  { %s18_s13 = vpop.sfrf %17 }
   0x9   :  { %p23_p0 = scmp.ne.s32.totalorder %s18_s13, 0 }
   0xb   :  { %22 = shalt.err (%p23_p0)  }

</bundles_post_ra>
